<compile_context>
chip_gen: v7x
topology: tpu7x:2x2x1
jax: 0.10.0
libtpu: 0.0.40
codegen_flags: <defaults>
</compile_context>

<pallas_src>
import functools
import math

import jax
import jax.numpy as jnp
from jax.experimental import pallas as pl
from jax.experimental.pallas import tpu as pltpu


# --------------------------------------------------------------------------
# Kernels
# --------------------------------------------------------------------------
def _attention_kernel(q_ref, k_ref, o_ref, *, inv_scale):
    """Single sample. q_ref: (1, H), k_ref: (N, H), o_ref: (1, H)."""
    q = q_ref[...].astype(jnp.float32)                     # (1, H)
    k = k_ref[...].astype(jnp.float32)                     # (N, H)

    # VPU multiply + lane (H) reduce; no transpose, no 1-column MXU matmul.
    scores = jnp.sum(k * q, axis=-1, keepdims=True) * inv_scale   # (N, 1)

    # Numerically stable softmax over the agent axis (sublanes).
    m = jnp.max(scores, axis=0, keepdims=True)             # (1, 1)
    e = jnp.exp(scores - m)                                # (N, 1)
    denom = jnp.sum(e, axis=0, keepdims=True)              # (1, 1)
    w = e / denom                                          # (N, 1)

    # Weighted sum over agents (sublane reduce) -> (1, H).
    attn = jnp.sum(w * k, axis=0, keepdims=True)
    o_ref[...] = attn.astype(o_ref.dtype)


def _attention_batched_kernel(q_ref, k_ref, o_ref, *, inv_scale):
    """Batched. q_ref: (Bt, H), k_ref: (Bt, N, H), o_ref: (Bt, H)."""
    q = q_ref[...].astype(jnp.float32)                     # (Bt, H)
    k = k_ref[...].astype(jnp.float32)                     # (Bt, N, H)

    # scores[b, n] = <k[b, n, :], q[b, :]> / sqrt(H)   (VPU mul + lane reduce)
    scores = jnp.sum(k * q[:, None, :], axis=-1) * inv_scale      # (Bt, N)

    m = jnp.max(scores, axis=-1, keepdims=True)            # (Bt, 1)
    e = jnp.exp(scores - m)                                # (Bt, N)
    denom = jnp.sum(e, axis=-1, keepdims=True)             # (Bt, 1)
    w = e / denom                                          # (Bt, N)

    # attn[b, :] = sum_n w[b, n] * k[b, n, :]   (small-N reduce stays off MXU)
    attn = jnp.sum(w[:, :, None] * k, axis=1)              # (Bt, H)
    o_ref[...] = attn.astype(o_ref.dtype)


# --------------------------------------------------------------------------
# Wrappers
# --------------------------------------------------------------------------
def attention(query, key):
    """PyTorch-equivalent forward: query (H,), key (N, H) -> (H,)."""
    assert query.ndim == 1 and key.ndim == 2
    n, h = key.shape
    assert query.shape[0] == h
    inv_scale = 1.0 / math.sqrt(h)

    out = pl.pallas_call(
        functools.partial(_attention_kernel, inv_scale=inv_scale),
        out_shape=jax.ShapeDtypeStruct((1, h), query.dtype),
        in_specs=[
            pl.BlockSpec(memory_space=pltpu.MemorySpace.VMEM),  # query (1, H)
            pl.BlockSpec(memory_space=pltpu.MemorySpace.VMEM),  # key   (N, H)
        ],
        out_specs=pl.BlockSpec(memory_space=pltpu.MemorySpace.VMEM),
    )(query.reshape(1, h), key)
    return out.reshape(h)


def attention_batched(query, key, *, block_b=128):
    """Batched forward: query (B, H), key (B, N, H) -> (B, H).

    One pallas_call, grid over the batch axis ("parallel" -> v7x 2-TC sharding).
    """
    assert query.ndim == 2 and key.ndim == 3
    b, h = query.shape
    bk, n, hk = key.shape
    assert b == bk and h == hk
    inv_scale = 1.0 / math.sqrt(h)

    block_b = min(block_b, b)
    if block_b != b:
        # Second-to-last dim of the 2-D query/out blocks must be a sublane
        # multiple when it is not the full array extent.
        block_b = max(8, (block_b // 8) * 8)
    pad_b = (-b) % block_b
    if pad_b:
        # Zero padding is safe: zero keys -> zero scores -> uniform softmax
        # over zero rows -> zero output; padded rows are sliced off below.
        query = jnp.pad(query, ((0, pad_b), (0, 0)))
        key = jnp.pad(key, ((0, pad_b), (0, 0), (0, 0)))
    bp = b + pad_b

    out = pl.pallas_call(
        functools.partial(_attention_batched_kernel, inv_scale=inv_scale),
        out_shape=jax.ShapeDtypeStruct((bp, h), query.dtype),
        grid=(bp // block_b,),
        in_specs=[
            pl.BlockSpec((block_b, h), lambda i: (i, 0)),        # query tile
            pl.BlockSpec((block_b, n, h), lambda i: (i, 0, 0)),  # key tile
        ],
        out_specs=pl.BlockSpec((block_b, h), lambda i: (i, 0)),
        compiler_params=pltpu.CompilerParams(
            dimension_semantics=("parallel",)),
    )(query, key)
    return out[:b]


# --------------------------------------------------------------------------
# Reference + test
# --------------------------------------------------------------------------
def _reference(query, key):
    h = query.shape[0]
    scores = (key @ query) / jnp.sqrt(jnp.float32(h))      # (N,)
    w = jax.nn.softmax(scores, axis=0)[:, None]            # (N, 1)
    return jnp.sum(w * key, axis=0)                        # (H,)


if __name__ == "__main__":
    hidden_size = 32
    agent_nums = 8
    batch = 16

    k0, k1, k2, k3 = jax.random.split(jax.random.PRNGKey(0), 4)

    # ---- single-sample path (module semantics) ----
    query = jax.random.normal(k0, (hidden_size,), dtype=jnp.float32)
    key = jax.random.normal(k1, (agent_nums, hidden_size), dtype=jnp.float32)

    out = attention(query, key)
    jax.block_until_ready(out)
    ref = _reference(query, key)
    assert out.shape == (hidden_size,)
    assert jnp.allclose(out, ref, atol=1e-5, rtol=1e-5), (out, ref)

    # ---- batched path (amortizes launch/grid-step overhead) ----
    qb = jax.random.normal(k2, (batch, hidden_size), dtype=jnp.float32)
    kb = jax.random.normal(k3, (batch, agent_nums, hidden_size),
                           dtype=jnp.float32)
    outb = attention_batched(qb, kb)
    jax.block_until_ready(outb)
    refb = jax.vmap(_reference)(qb, kb)
    assert outb.shape == (batch, hidden_size)
    assert jnp.allclose(outb, refb, atol=1e-5, rtol=1e-5), (outb, refb)

    print("KERNEL_OK")
</pallas_src>

<mosaic_0001>
module attributes {stable_mosaic.version = 11 : i64} {
  func.func @_attention_kernel(%arg0: memref<1x32xf32, #tpu.memory_space<vmem>>, %arg1: memref<8x32xf32, #tpu.memory_space<vmem>>, %arg2: memref<1x32xf32, #tpu.memory_space<vmem>>) attributes {dimension_semantics = [], scalar_prefetch = 0 : i64, scratch_operands = 0 : i64, tpu.core_type = #tpu.core_type<tc>} {
    %c0 = arith.constant 0 : index
    %c0_0 = arith.constant 0 : index
    %0 = vector.load %arg0[%c0, %c0_0] : memref<1x32xf32, #tpu.memory_space<vmem>>, vector<1x32xf32>
    %c0_1 = arith.constant 0 : index
    %c0_2 = arith.constant 0 : index
    %1 = vector.load %arg1[%c0_1, %c0_2] : memref<8x32xf32, #tpu.memory_space<vmem>>, vector<8x32xf32>
    %2 = vector.broadcast %0 : vector<1x32xf32> to vector<8x32xf32>
    %3 = arith.mulf %1, %2 : vector<8x32xf32>
    %cst = arith.constant dense<0.000000e+00> : vector<8xf32>
    %4 = vector.multi_reduction <add>, %3, %cst [1] : vector<8x32xf32> to vector<8xf32>
    %5 = vector.shape_cast %4 : vector<8xf32> to vector<8x1xf32>
    %cst_3 = arith.constant 0.176776692 : f32
    %6 = vector.broadcast %cst_3 : f32 to vector<8x1xf32>
    %7 = arith.mulf %5, %6 : vector<8x1xf32>
    %cst_4 = arith.constant dense<0xFF800000> : vector<1xf32>
    %8 = vector.multi_reduction <maximumf>, %7, %cst_4 [0] : vector<8x1xf32> to vector<1xf32>
    %9 = vector.shape_cast %8 : vector<1xf32> to vector<1x1xf32>
    %10 = vector.broadcast %9 : vector<1x1xf32> to vector<8x1xf32>
    %11 = arith.subf %7, %10 : vector<8x1xf32>
    %12 = math.exp %11 : vector<8x1xf32>
    %cst_5 = arith.constant dense<0.000000e+00> : vector<1xf32>
    %13 = vector.multi_reduction <add>, %12, %cst_5 [0] : vector<8x1xf32> to vector<1xf32>
    %14 = vector.shape_cast %13 : vector<1xf32> to vector<1x1xf32>
    %15 = vector.broadcast %14 : vector<1x1xf32> to vector<8x1xf32>
    %16 = arith.divf %12, %15 : vector<8x1xf32>
    %17 = vector.broadcast %16 : vector<8x1xf32> to vector<8x32xf32>
    %18 = arith.mulf %17, %1 : vector<8x32xf32>
    %cst_6 = arith.constant dense<0.000000e+00> : vector<32xf32>
    %19 = vector.multi_reduction <add>, %18, %cst_6 [0] : vector<8x32xf32> to vector<32xf32>
    %20 = vector.shape_cast %19 : vector<32xf32> to vector<1x32xf32>
    %c0_7 = arith.constant 0 : index
    %c0_8 = arith.constant 0 : index
    %21 = vector.load %arg2[%c0_7, %c0_8] : memref<1x32xf32, #tpu.memory_space<vmem>>, vector<1x32xf32>
    tpu.vector_store %arg2[%c0_7, %c0_8], %20 {strides = array<i32>} : memref<1x32xf32, #tpu.memory_space<vmem>>, vector<1x32xf32>,
    return
  }
}

</mosaic_0001>

<bundles_post_ra>
// kernel: tpu_custom_call.1
= control target key start
LH: loop header
LB: loop body
LE: loop exit
PB: predicated region body
PF: predicated region fallthrough
CT: control target
= control target key end

     0   :  { %7 = vsyncpa [#allocation3], 0  ;;  %s229_s0 = inlined_call_operand.hbm [shape: f32[1,32], index: 0, kind: input, shape index: {}]   ;;  %s230_s1 = inlined_call_operand.hbm [shape: f32[8,32], index: 1, kind: input, shape index: {}]   ;;  %s231_s2 = inlined_call_operand.hbm [shape: f32[1,32], index: 2, kind: output, shape index: {}]  }
   0x1   :  { %8 = vsyncpa [#allocation6], 0 }
   0x2   :  { %9 = vsyncpa [#allocation4], 0  ;;  %s173_s9 = smov [#allocation2]   ;;  %s174_s11 = smov [#allocation5]  }
   0x3   :  { %s16_s10 = sshll.u32 %s173_s9, 4  ;;  %s26_s12 = sshll.u32 %s174_s11, 4  ;;  %s17_s10 = int_to_ptr.vmem [resolvable:$true] %s16_s10  ;;  %s27_s12 = int_to_ptr.vmem [resolvable:$true] %s26_s12 }
   0x4   :  { %s101_s15 = scalar_lea.hbm %s229_s0, 16 }
   0x5   :  { %p102_p0 = scmp.ne.s32.totalorder %s229_s0, %s101_s15  ;;  %p105_p1 = scmp.lt.u32.totalorder %s101_s15, %s229_s0 }
   0x7   :  { %p107_p2 = pnand %p105_p1, %p102_p0 }
   0x9   :  { %110 = shalt.err (!%p107_p2)
}
   0xa   :  { %s111_s20 = scalar_lea.vmem %s17_s10, 16  ;;  %s115_s21 = scalar_lea.vmem %s17_s10, 32 }
   0xb   :  { %p112_p3 = scmp.ne.s32.totalorder %s17_s10, %s111_s20  ;;  %p116_p4 = scmp.lt.s32.totalorder %s17_s10, %s17_s10 }
   0xc   :  { %p117_p5 = scmp.lt.s32.totalorder %s115_s21, %s111_s20 }
   0xe   :  { %p118_p6 = por %p117_p5, %p116_p4 }
  0x10   :  { %p119_p7 = pnand %p118_p6, %p112_p3 }
  0x12   :  { %122 = shalt.err (!%p119_p7)
}
  0x13   :  { %19 = dma.hbm_to_vmem [thread:$0]  %s229_s0, 16, %s17_s10, [#allocation3]  }
  0x14   :  { %s123_s26 = scalar_lea.hbm %s230_s1, 128 }
  0x15   :  { %p124_p8 = scmp.ne.s32.totalorder %s230_s1, %s123_s26  ;;  %p127_p9 = scmp.lt.u32.totalorder %s123_s26, %s230_s1 }
  0x17   :  { %p129_p10 = pnand %p127_p9, %p124_p8 }
  0x19   :  { %132 = shalt.err (!%p129_p10)
}
  0x1a   :  { %s133_s3 = scalar_lea.vmem %s27_s12, 128  ;;  %p138_p12 = scmp.lt.s32.totalorder %s27_s12, %s27_s12 }
  0x1b   :  { %p134_p11 = scmp.ne.s32.totalorder %s27_s12, %s133_s3  ;;  %p139_p13 = scmp.lt.s32.totalorder %s133_s3, %s133_s3 }
  0x1d   :  { %p140_p0 = por %p139_p13, %p138_p12 }
  0x1f   :  { %p141_p1 = pnand %p140_p0, %p134_p11 }
  0x21   :  { %144 = shalt.err (!%p141_p1)
}
  0x22   :  { %29 = dma.hbm_to_vmem [thread:$0]  %s230_s1, 128, %s27_s12, [#allocation6]  }
  0x23   :  { %167 = dma.done.wait [#allocation3], 16  }
  0x24   :  { %168 = vsyncadd [#allocation3], 4294967280 }
  0x25   :  { %169 = dma.done.wait [#allocation6], 128  }
  0x26   :  { %170 = vsyncadd [#allocation6], 4294967168  ;;  %v93_v0 = vld [vmem:[#allocation2] ss:$0 sm:$0xff]  ;;  %v37_v1 = vld [vmem:[#allocation5] sm:$0xff]  ;;  %vm45_vm0 = vcmask 261120  }
  0x27   :  { %v44_v2 = vmul.f32 %v93_v0, %v37_v1  ;;  %s175_s1 = smov [#allocation7]   ;;  %vm75_vm1 = vcmask 253952  }
  0x28   :  { %s83_s5 = sshll.u32 %s175_s1, 4  ;;  %s84_s5 = int_to_ptr.vmem [resolvable:$true] %s83_s5 }
  0x29   :  { %v46_v3 = vsel %vm45_vm0, %v44_v2, 0.0  ;;  %s145_s6 = scalar_lea.vmem %s84_s5, 16  ;;  %s149_s7 = scalar_lea.vmem %s84_s5, 32 }
  0x2a   :  { %47 = vadd.xlane.f32.xlu0 %v46_v3  ;;  %p146_p2 = scmp.ne.s32.totalorder %s84_s5, %s145_s6  ;;  %p150_p3 = scmp.lt.s32.totalorder %s84_s5, %s84_s5 }
  0x2b   :  { %p151_p4 = scmp.lt.s32.totalorder %s149_s7, %s145_s6 }
  0x2d   :  { %p152_p5 = por %p151_p4, %p150_p3 }
  0x2f   :  { %p153_p6 = pnand %p152_p5, %p146_p2 }
  0xb7   :  { %v48_v4 = vpop.xlane.xlu0 %47 }
  0xb8   :  { %v49_v5 = vmul.f32 0.17677669, %v48_v4 }
  0xba   :  { %v50_v6 = vrot.slane %v49_v5, 4 }
  0xbc   :  { %v51_v7 = vmax.f32 %v49_v5, %v50_v6 }
  0xbe   :  { %v52_v8 = vrot.slane %v51_v7, 2 }
  0xc0   :  { %v53_v9 = vmax.f32 %v51_v7, %v52_v8 }
  0xc2   :  { %v54_v10 = vrot.slane %v53_v9, 1 }
  0xc4   :  { %v55_v11 = vmax.f32 %v53_v9, %v54_v10 }
  0xc6   :  { %v56_v12 = vsub.f32 %v49_v5, %v55_v11 }
  0xc8   :  { %v57_v13 = vmul.f32 1.442695, %v56_v12 }
  0xca   :  { %97 = vpow2.f32 %v57_v13 }
  0xd4   :  { %v98_v14 = vpop.eup %97 }
  0xd5   :  { %v59_v15 = vrot.slane %v98_v14, 4 }
  0xd7   :  { %v60_v16 = vadd.f32 %v98_v14, %v59_v15 }
  0xd9   :  { %v61_v17 = vrot.slane %v60_v16, 2 }
  0xdb   :  { %v62_v18 = vadd.f32 %v61_v17, %v60_v16 }
  0xdd   :  { %v63_v19 = vrot.slane %v62_v18, 1 }
  0xdf   :  { %v64_v20 = vadd.f32 %v63_v19, %v62_v18 }
  0xe1   :  { %99 = vrcp.f32 %v64_v20 }
  0xeb   :  { %v100_v21 = vpop.eup %99 }
  0xec   :  { %v66_v22 = vmul.f32 %v100_v21, %v98_v14 }
  0xee   :  { %v67_v23 = vmul.f32 %v66_v22, %v37_v1 }
  0xf0   :  { %v68_v24 = vsel %vm45_vm0, %v67_v23, 0.0 }
  0xf1   :  { %v69_v25 = vrot.slane %v68_v24, 4 }
  0xf3   :  { %v70_v26 = vadd.f32 %v69_v25, %v68_v24 }
  0xf5   :  { %v71_v27 = vrot.slane %v70_v26, 2 }
  0xf7   :  { %v72_v28 = vadd.f32 %v71_v27, %v70_v26 }
  0xf9   :  { %v73_v29 = vrot.slane %v72_v28, 1 }
  0xfb   :  { %v74_v30 = vadd.f32 %v73_v29, %v72_v28 }
  0xfd   :  { %76 = vst.msk [vmem:[#allocation7] sm:$0x1] %vm75_vm1, %v74_v30 }
  0xfe   :  { %156 = shalt.err (!%p153_p6)
}
  0xff   :  { %s157_s10 = scalar_lea.hbm %s231_s2, 16 }
 0x100   :  { %p158_p7 = scmp.ne.s32.totalorder %s231_s2, %s157_s10  ;;  %p161_p8 = scmp.lt.u32.totalorder %s157_s10, %s231_s2 }
 0x102   :  { %p163_p9 = pnand %p161_p8, %p158_p7 }
 0x104   :  { %166 = shalt.err (!%p163_p9)
}
 0x105   :  { %86 = dma.vmem_to_hbm [thread:$0]  %s84_s5, 16, %s231_s2, [#allocation4]  }
 0x106   :  { %171 = dma.done.wait [#allocation4], 16  }
 0x107   :  { %172 = vsyncadd [#allocation4], 4294967280 }
 0x108   :  { %90 = vsyncpa [#allocation3], 1 }
 0x109   :  { %91 = vsyncpa [#allocation6], 1 }
 0x10a   :  { %92 = vsyncpa [#allocation4], 1 }

</bundles_post_ra>
